<compile_context>
chip_gen: v7x
topology: tpu7x:2x2x1
jax: 0.10.0
libtpu: 0.0.40
codegen_flags: <defaults>
</compile_context>

<pallas_src>
import functools
import math

import jax
import jax.numpy as jnp
from jax.experimental import pallas as pl
from jax.experimental.pallas import tpu as pltpu

_LN_EPS = 1e-5


def _round_up(x, m):
    return (x + m - 1) // m * m


def _cdiv(a, b):
    return (a + b - 1) // b


@functools.lru_cache(maxsize=1)
def _vmem_budget_bytes():
    """Scoped-VMEM budget to request, per TPU generation."""
    try:
        cap = pltpu.get_tpu_info().vmem_capacity_bytes
    except Exception:
        cap = 64 * 1024 * 1024  # conservative default
    if cap <= 64 * 1024 * 1024:          # v7x: 64 MiB physical -> leave headroom
        return 48 * 1024 * 1024
    return 96 * 1024 * 1024              # v5e / v6e: 128 MiB physical


# ------------------------------ parameter preprocessing ------------------------------

def prepare_params(params, compute_dtype=jnp.bfloat16):
    """One-time prep: fold the LayerNorm affine into W1/b1, split W2/b2 into GLU halves.

    Hoisted out of the per-call path. Weights are cast to `compute_dtype` (bf16 MXU
    operands), biases stay f32.
    """
    gamma = params["ln_gamma"].astype(jnp.float32)
    beta = params["ln_beta"].astype(jnp.float32)
    w1 = params["w1"].astype(jnp.float32)
    b1 = params["b1"].astype(jnp.float32)
    w2 = params["w2"].astype(jnp.float32)
    b2 = params["b2"].astype(jnp.float32)

    w1f = gamma[:, None] * w1                    # (E, M)
    b1f = beta @ w1 + b1                         # (M,)
    O = w2.shape[1] // 2
    return {
        "w1": w1f.astype(compute_dtype),
        "b1": b1f.reshape(1, -1),
        "w2a": w2[:, :O].astype(compute_dtype),
        "w2g": w2[:, O:].astype(compute_dtype),
        "b2a": b2[:O].reshape(1, -1),
        "b2g": b2[O:].reshape(1, -1),
    }


# ------------------------------------- kernel ----------------------------------------

def _normmlp_kernel(x_ref, w1_ref, b1_ref, w2a_ref, w2g_ref, b2a_ref, b2g_ref,
                    o_ref, *, eps: float, pack: int):
    # ---- LayerNorm statistics in f32 (affine already folded into w1/b1) ----
    x = x_ref[...].astype(jnp.float32)                           # (rt, E)
    mean = jnp.mean(x, axis=-1, keepdims=True)
    xc = x - mean
    var = jnp.mean(xc * xc, axis=-1, keepdims=True)
    xn = xc * jax.lax.rsqrt(var + eps)

    # ---- hidden: (folded) Linear(E->M) + Tanh; bf16 operands into MXU, f32 accumulate ----
    h = jnp.dot(xn.astype(w1_ref.dtype), w1_ref[...],
                preferred_element_type=jnp.float32) + b1_ref[...]
    h = jnp.tanh(h)                                              # (rt, M), f32

    # ---- output: Linear(M->2O) + GLU, the two halves as lane-contiguous matmuls ----
    hb = h.astype(w2a_ref.dtype)
    a = jnp.dot(hb, w2a_ref[...], preferred_element_type=jnp.float32) + b2a_ref[...]
    g = jnp.dot(hb, w2g_ref[...], preferred_element_type=jnp.float32) + b2g_ref[...]

    if pack > 1:
        # Lane-pack BEFORE the transcendentals: sigmoid (EUP) and the GLU multiply (VALU)
        # then run on 128-lane-dense vregs, and the packed layout is already the dense
        # output layout (row-major order unchanged; undone by a free reshape outside).
        rt, o = a.shape
        a = a.reshape(rt // pack, pack * o)
        g = g.reshape(rt // pack, pack * o)

    o_ref[...] = (a * jax.nn.sigmoid(g)).astype(o_ref.dtype)


# --------------------------------- call construction ---------------------------------

def _estimate_vmem(rt, E, M, O, buffered_weights, x_bytes, out_bytes, w_bytes):
    wmul = 1 if buffered_weights else 2
    weights = wmul * ((E * M + 2 * M * O) * w_bytes + (M + 2 * O) * 4)
    io = 2 * rt * E * x_bytes + 2 * rt * O * out_bytes           # double-buffered x / out
    inter = rt * (E + M + 3 * O) * 4                             # xn, h, a, g, y (f32)
    return weights + io + inter


def _pick_row_tile(R, E, M, O, pack, x_bytes, out_bytes, w_bytes, budget):
    granule = 8 * pack
    # assume worst case (double-buffered) weights resident every step
    weights = 2 * ((E * M + 2 * M * O) * w_bytes + (M + 2 * O) * 4)
    per_row = 2 * E * x_bytes + 2 * O * out_bytes + (E + M + 3 * O) * 4
    # keep (weights + per-row blocks) within ~40% of the VMEM budget
    avail = max(int(0.4 * budget) - weights, per_row * granule)
    rt_vmem = max(granule, (avail // per_row) // granule * granule)
    # at least 4 row blocks when possible: shards the "parallel" axis across v7x's two
    # TensorCores and gives the pipeline something to overlap on all generations
    rt_par = max(granule, _round_up(_cdiv(R, 4), granule))
    return max(granule, min(rt_vmem, rt_par, 4096))


def _build_call(R_pad, E, M, O, rt, pack, buffered_weights, eps,
                x_dtype, out_dtype, w_dtype, vmem_limit):
    w_kwargs = {"pipeline_mode": pl.Buffered(1)} if buffered_weights else {}

    def const_spec(shape):
        # invariant blocks (constant index_map): no need to double-buffer
        return pl.BlockSpec(shape, lambda i: (0, 0), **w_kwargs)

    in_specs = [
        pl.BlockSpec((rt, E), lambda i: (i, 0)),   # x rows
        const_spec((E, M)),                        # W1 (LN-affine folded, bf16)
        const_spec((1, M)),                        # b1 (folded, f32)
        const_spec((M, O)),                        # W2 "value" half (bf16)
        const_spec((M, O)),                        # W2 "gate" half (bf16)
        const_spec((1, O)),                        # b2 "value" half
        const_spec((1, O)),                        # b2 "gate" half
    ]
    if pack > 1:
        out_shape = jax.ShapeDtypeStruct((R_pad // pack, pack * O), out_dtype)
        out_spec = pl.BlockSpec((rt // pack, pack * O), lambda i: (i, 0))
    else:
        out_shape = jax.ShapeDtypeStruct((R_pad, O), out_dtype)
        out_spec = pl.BlockSpec((rt, O), lambda i: (i, 0))

    kernel = functools.partial(_normmlp_kernel, eps=eps, pack=pack)
    return pl.pallas_call(
        kernel,
        out_shape=out_shape,
        grid_spec=pltpu.PrefetchScalarGridSpec(
            num_scalar_prefetch=0,
            grid=(R_pad // rt,),
            in_specs=in_specs,
            out_specs=out_spec,
        ),
        compiler_params=pltpu.CompilerParams(
            dimension_semantics=("parallel",),
            vmem_limit_bytes=int(vmem_limit),
        ),
    )


@functools.lru_cache(maxsize=128)
def _get_call(R_pad, E, M, O, rt, pack, eps, x_dtype_name, out_dtype_name,
              w_dtype_name, budget):
    """Build (and cache) the pallas_call for this shape signature.

    Feature negotiation (packed output, single-buffered weights) happens here ONCE, at
    compile time, via AOT lower().compile() probes -- never by executing the kernel, so
    genuine runtime errors are never swallowed.
    """
    x_dtype = jnp.dtype(x_dtype_name)
    out_dtype = jnp.dtype(out_dtype_name)
    w_dtype = jnp.dtype(w_dtype_name)

    probe_args = (
        jax.ShapeDtypeStruct((R_pad, E), x_dtype),
        jax.ShapeDtypeStruct((E, M), w_dtype),
        jax.ShapeDtypeStruct((1, M), jnp.float32),
        jax.ShapeDtypeStruct((M, O), w_dtype),
        jax.ShapeDtypeStruct((M, O), w_dtype),
        jax.ShapeDtypeStruct((1, O), jnp.float32),
        jax.ShapeDtypeStruct((1, O), jnp.float32),
    )

    configs = []
    for p in ((pack, 1) if pack > 1 else (1,)):
        for buffered in (True, False):
            if (p, buffered) not in configs:
                configs.append((p, buffered))

    for p, buffered in configs:
        est = _estimate_vmem(rt, E, M, O, buffered,
                             x_dtype.itemsize, out_dtype.itemsize, w_dtype.itemsize)
        vmem_limit = min(budget, max(16 * 1024 * 1024, 2 * est))
        try:
            jitted = jax.jit(_build_call(R_pad, E, M, O, rt, p, buffered, eps,
                                         x_dtype, out_dtype, w_dtype, vmem_limit))
            jitted.lower(*probe_args).compile()   # compile-time-only probe
        except Exception:
            continue
        return jitted, p

    # Every candidate failed to compile: return the plainest config unprobed so the real
    # call surfaces the genuine error instead of masking it.
    p = configs[-1][0]
    est = _estimate_vmem(rt, E, M, O, False,
                         x_dtype.itemsize, out_dtype.itemsize, w_dtype.itemsize)
    vmem_limit = min(budget, max(16 * 1024 * 1024, 2 * est))
    return jax.jit(_build_call(R_pad, E, M, O, rt, p, False, eps,
                               x_dtype, out_dtype, w_dtype, vmem_limit)), p


# ------------------------------------ public API -------------------------------------

def normmlp_core(x2d, prepared, *, eps=_LN_EPS, row_tile=None):
    """x2d: (R, E) -> (R, O) with O = out_dim // 2 (GLU already applied)."""
    if eps <= 0.0:
        raise ValueError("eps must be > 0: zero-padded rows rely on rsqrt(var+eps).")
    R, E = x2d.shape
    M = prepared["w1"].shape[1]
    O = prepared["w2a"].shape[1]

    x_dtype = jnp.dtype(x2d.dtype)
    out_dtype = x_dtype
    w_dtype = jnp.dtype(prepared["w1"].dtype)

    # pack factor so the output block's lane dim is a multiple of 128 (dense vst)
    pack = 128 // math.gcd(O, 128)
    if pack > 8:            # pathological O: packing not worth the tile blow-up
        pack = 1
    granule = 8 * pack

    budget = _vmem_budget_bytes()
    if row_tile is None:
        rt = _pick_row_tile(R, E, M, O, pack, x_dtype.itemsize, out_dtype.itemsize,
                            w_dtype.itemsize, budget)
    else:
        rt = max(granule, _round_up(row_tile, granule))
    rt = min(rt, max(granule, _round_up(R, granule)))
    R_pad = _round_up(R, rt)
    x_pad = x2d if R_pad == R else jnp.pad(x2d, ((0, R_pad - R), (0, 0)))

    call, used_pack = _get_call(R_pad, E, M, O, rt, pack, float(eps),
                                x_dtype.name, out_dtype.name, w_dtype.name, budget)
    out = call(x_pad, prepared["w1"], prepared["b1"], prepared["w2a"],
               prepared["w2g"], prepared["b2a"], prepared["b2g"])
    if used_pack > 1:
        out = out.reshape(R_pad, O)   # undo row packing (row-major order unchanged)
    return out[:R]


def _reshape_output(mb2d, B, T, in_channel, bandwidth, complex_mask):
    reim = 2 if complex_mask else 1
    mb = mb2d.reshape(B, T, in_channel, bandwidth, reim)
    # Complex construction + (0,2,3,1) permute written as one fusable XLA expression.
    # TODO(synk): emit transposed (O, rows) tiles from the kernel to fold this permute in.
    if complex_mask:
        return jnp.transpose(jax.lax.complex(mb[..., 0], mb[..., 1]), (0, 2, 3, 1))
    return jnp.transpose(mb[..., 0], (0, 2, 3, 1))       # (B, C, BW, T)


def normmlp_forward(qb, params, *, in_channel, bandwidth, complex_mask=True,
                    eps=_LN_EPS, row_tile=None, compute_dtype=jnp.bfloat16):
    """qb: (B, T, E) -> complex (B, in_channel, bandwidth, T) if complex_mask else real.

    `params` may be either the raw module parameters or the result of prepare_params()
    (preferred: hoists the fold/split out of the per-call path).
    """
    B, T, E = qb.shape
    prepared = params if "w2a" in params else prepare_params(params, compute_dtype)
    mb = normmlp_core(qb.reshape(B * T, E), prepared, eps=eps, row_tile=row_tile)
    return _reshape_output(mb, B, T, in_channel, bandwidth, complex_mask)


# ------------------------- references (for correctness checking) -------------------------

def _reference_f32(qb, params, *, in_channel, bandwidth, complex_mask=True, eps=_LN_EPS):
    x = qb.astype(jnp.float32)
    mean = jnp.mean(x, axis=-1, keepdims=True)
    var = jnp.mean((x - mean) ** 2, axis=-1, keepdims=True)
    xn = (x - mean) / jnp.sqrt(var + eps) * params["ln_gamma"] + params["ln_beta"]
    h = jnp.tanh(xn @ params["w1"] + params["b1"])
    y = h @ params["w2"] + params["b2"]
    half = y.shape[-1] // 2
    mb = y[..., :half] * jax.nn.sigmoid(y[..., half:])
    B, T, _ = qb.shape
    return _reshape_output(mb.reshape(B * T, -1), B, T, in_channel, bandwidth, complex_mask)


def _reference_mirror(qb, params, *, in_channel, bandwidth, complex_mask=True,
                      eps=_LN_EPS, compute_dtype=jnp.bfloat16):
    # mirrors the kernel numerics exactly (folded LN affine, bf16 operands, f32 accumulate)
    B, T, E = qb.shape
    prep = prepare_params(params, compute_dtype)
    x = qb.reshape(B * T, E).astype(jnp.float32)
    mean = jnp.mean(x, axis=-1, keepdims=True)
    xc = x - mean
    var = jnp.mean(xc * xc, axis=-1, keepdims=True)
    xn = xc * jax.lax.rsqrt(var + eps)
    h = jnp.tanh(jnp.dot(xn.astype(compute_dtype), prep["w1"],
                         preferred_element_type=jnp.float32) + prep["b1"])
    hb = h.astype(compute_dtype)
    a = jnp.dot(hb, prep["w2a"], preferred_element_type=jnp.float32) + prep["b2a"]
    g = jnp.dot(hb, prep["w2g"], preferred_element_type=jnp.float32) + prep["b2g"]
    mb = a * jax.nn.sigmoid(g)
    return _reshape_output(mb, B, T, in_channel, bandwidth, complex_mask)


def make_params(key, emb_dim, mlp_dim, bandwidth, in_channel, reim=2):
    out_dim = bandwidth * in_channel * reim * 2   # Linear out features (GLU halves it)
    k1, k2, k3, k4, k5, k6 = jax.random.split(key, 6)
    s1 = 1.0 / math.sqrt(emb_dim)
    s2 = 1.0 / math.sqrt(mlp_dim)
    return {
        "ln_gamma": 1.0 + 0.1 * jax.random.normal(k5, (emb_dim,), jnp.float32),
        "ln_beta": 0.1 * jax.random.normal(k6, (emb_dim,), jnp.float32),
        # stored (in, out) == PyTorch weight.T
        "w1": jax.random.uniform(k1, (emb_dim, mlp_dim), jnp.float32, -s1, s1),
        "b1": jax.random.uniform(k2, (mlp_dim,), jnp.float32, -s1, s1),
        "w2": jax.random.uniform(k3, (mlp_dim, out_dim), jnp.float32, -s2, s2),
        "b2": jax.random.uniform(k4, (out_dim,), jnp.float32, -s2, s2),
    }


if __name__ == "__main__":
    # Small shapes consistent with the module.
    B, T = 2, 8
    emb_dim, mlp_dim = 32, 32
    bandwidth, in_channel = 16, 2
    complex_mask = True

    key = jax.random.PRNGKey(0)
    kx, kp = jax.random.split(key)
    qb = jax.random.normal(kx, (B, T, emb_dim), jnp.float32)
    params = make_params(kp, emb_dim, mlp_dim, bandwidth, in_channel,
                         reim=2 if complex_mask else 1)

    # One-time parameter preprocessing (folded LN affine, split GLU halves).
    prepared = prepare_params(params)

    out = normmlp_forward(qb, prepared, in_channel=in_channel,
                          bandwidth=bandwidth, complex_mask=complex_mask)
    out = jax.block_until_ready(out)

    ref_mirror = _reference_mirror(qb, params, in_channel=in_channel,
                                   bandwidth=bandwidth, complex_mask=complex_mask)
    ref_f32 = _reference_f32(qb, params, in_channel=in_channel,
                             bandwidth=bandwidth, complex_mask=complex_mask)

    assert out.shape == (B, in_channel, bandwidth, T)
    assert bool(jnp.all(jnp.isfinite(jnp.abs(out))))
    # tight vs. a reference mirroring the kernel's bf16/f32 numerics
    assert jnp.allclose(out, ref_mirror, atol=5e-3, rtol=5e-3)
    # loose vs. the pure-f32 PyTorch-equivalent reference (bf16 weight quantization error)
    assert jnp.allclose(out, ref_f32, atol=6e-2, rtol=6e-2)

    print("KERNEL_OK")
</pallas_src>

<mosaic_0001>
module attributes {stable_mosaic.version = 11 : i64} {
  func.func @_normmlp_kernel(%arg0: i32, %arg1: memref<16x32xf32, #tpu.memory_space<vmem>>, %arg2: memref<32x32xbf16, #tpu.memory_space<vmem>>, %arg3: memref<1x32xf32, #tpu.memory_space<vmem>>, %arg4: memref<32x64xbf16, #tpu.memory_space<vmem>>, %arg5: memref<32x64xbf16, #tpu.memory_space<vmem>>, %arg6: memref<1x64xf32, #tpu.memory_space<vmem>>, %arg7: memref<1x64xf32, #tpu.memory_space<vmem>>, %arg8: memref<16x64xf32, #tpu.memory_space<vmem>>) attributes {dimension_semantics = [#tpu.dimension_semantics<parallel>], iteration_bounds = array<i64: 1>, scalar_prefetch = 0 : i64, scratch_operands = 0 : i64, tpu.core_type = #tpu.core_type<tc>, window_params = [{transform_indices = @transform_0, window_bounds = array<i64: 16, 32>}, {pipeline_mode = #tpu.pipeline_mode<synchronous>, transform_indices = @transform_1, window_bounds = array<i64: 32, 32>}, {pipeline_mode = #tpu.pipeline_mode<synchronous>, transform_indices = @transform_2, window_bounds = array<i64: 1, 32>}, {pipeline_mode = #tpu.pipeline_mode<synchronous>, transform_indices = @transform_3, window_bounds = array<i64: 32, 64>}, {pipeline_mode = #tpu.pipeline_mode<synchronous>, transform_indices = @transform_4, window_bounds = array<i64: 32, 64>}, {pipeline_mode = #tpu.pipeline_mode<synchronous>, transform_indices = @transform_5, window_bounds = array<i64: 1, 64>}, {pipeline_mode = #tpu.pipeline_mode<synchronous>, transform_indices = @transform_6, window_bounds = array<i64: 1, 64>}, {transform_indices = @transform_7, window_bounds = array<i64: 16, 64>}]} {
    %c0 = arith.constant 0 : index
    %c0_0 = arith.constant 0 : index
    %0 = vector.load %arg1[%c0, %c0_0] : memref<16x32xf32, #tpu.memory_space<vmem>>, vector<16x32xf32>
    %cst = arith.constant dense<0.000000e+00> : vector<16xf32>
    %1 = vector.multi_reduction <add>, %0, %cst [1] : vector<16x32xf32> to vector<16xf32>
    %2 = vector.shape_cast %1 : vector<16xf32> to vector<16x1xf32>
    %cst_1 = arith.constant 3.200000e+01 : f32
    %3 = vector.broadcast %cst_1 : f32 to vector<16x1xf32>
    %4 = arith.divf %2, %3 : vector<16x1xf32>
    %5 = vector.broadcast %4 : vector<16x1xf32> to vector<16x32xf32>
    %6 = arith.subf %0, %5 : vector<16x32xf32>
    %7 = arith.mulf %6, %6 : vector<16x32xf32>
    %cst_2 = arith.constant dense<0.000000e+00> : vector<16xf32>
    %8 = vector.multi_reduction <add>, %7, %cst_2 [1] : vector<16x32xf32> to vector<16xf32>
    %9 = vector.shape_cast %8 : vector<16xf32> to vector<16x1xf32>
    %cst_3 = arith.constant 3.200000e+01 : f32
    %10 = vector.broadcast %cst_3 : f32 to vector<16x1xf32>
    %11 = arith.divf %9, %10 : vector<16x1xf32>
    %cst_4 = arith.constant 9.99999974E-6 : f32
    %12 = vector.broadcast %cst_4 : f32 to vector<16x1xf32>
    %13 = arith.addf %11, %12 : vector<16x1xf32>
    %14 = math.rsqrt %13 : vector<16x1xf32>
    %15 = vector.broadcast %14 : vector<16x1xf32> to vector<16x32xf32>
    %16 = arith.mulf %6, %15 : vector<16x32xf32>
    %17 = arith.truncf %16 : vector<16x32xf32> to vector<16x32xbf16>
    %c0_5 = arith.constant 0 : index
    %c0_6 = arith.constant 0 : index
    %18 = vector.load %arg2[%c0_5, %c0_6] : memref<32x32xbf16, #tpu.memory_space<vmem>>, vector<32x32xbf16>
    %cst_7 = arith.constant dense<0.000000e+00> : vector<16x32xf32>
    %19 = tpu.matmul %17, %18, %cst_7 {dimension_numbers = #tpu.dot_dimension_numbers<[1], [0], [0], [1], [0, 0, 1, 1], [], []>} : vector<16x32xbf16>, vector<32x32xbf16>, vector<16x32xf32> -> vector<16x32xf32>
    %c0_8 = arith.constant 0 : index
    %c0_9 = arith.constant 0 : index
    %20 = vector.load %arg3[%c0_8, %c0_9] : memref<1x32xf32, #tpu.memory_space<vmem>>, vector<1x32xf32>
    %21 = vector.broadcast %20 : vector<1x32xf32> to vector<16x32xf32>
    %22 = arith.addf %19, %21 : vector<16x32xf32>
    %23 = math.tanh %22 : vector<16x32xf32>
    %24 = arith.truncf %23 : vector<16x32xf32> to vector<16x32xbf16>
    %c0_10 = arith.constant 0 : index
    %c0_11 = arith.constant 0 : index
    %25 = vector.load %arg4[%c0_10, %c0_11] : memref<32x64xbf16, #tpu.memory_space<vmem>>, vector<32x64xbf16>
    %cst_12 = arith.constant dense<0.000000e+00> : vector<16x64xf32>
    %26 = tpu.matmul %24, %25, %cst_12 {dimension_numbers = #tpu.dot_dimension_numbers<[1], [0], [0], [1], [0, 0, 1, 1], [], []>} : vector<16x32xbf16>, vector<32x64xbf16>, vector<16x64xf32> -> vector<16x64xf32>
    %c0_13 = arith.constant 0 : index
    %c0_14 = arith.constant 0 : index
    %27 = vector.load %arg6[%c0_13, %c0_14] : memref<1x64xf32, #tpu.memory_space<vmem>>, vector<1x64xf32>
    %28 = vector.broadcast %27 : vector<1x64xf32> to vector<16x64xf32>
    %29 = arith.addf %26, %28 : vector<16x64xf32>
    %c0_15 = arith.constant 0 : index
    %c0_16 = arith.constant 0 : index
    %30 = vector.load %arg5[%c0_15, %c0_16] : memref<32x64xbf16, #tpu.memory_space<vmem>>, vector<32x64xbf16>
    %cst_17 = arith.constant dense<0.000000e+00> : vector<16x64xf32>
    %31 = tpu.matmul %24, %30, %cst_17 {dimension_numbers = #tpu.dot_dimension_numbers<[1], [0], [0], [1], [0, 0, 1, 1], [], []>} : vector<16x32xbf16>, vector<32x64xbf16>, vector<16x64xf32> -> vector<16x64xf32>
    %c0_18 = arith.constant 0 : index
    %c0_19 = arith.constant 0 : index
    %32 = vector.load %arg7[%c0_18, %c0_19] : memref<1x64xf32, #tpu.memory_space<vmem>>, vector<1x64xf32>
    %33 = vector.broadcast %32 : vector<1x64xf32> to vector<16x64xf32>
    %34 = arith.addf %31, %33 : vector<16x64xf32>
    %35 = arith.negf %34 : vector<16x64xf32>
    %36 = math.exp %35 : vector<16x64xf32>
    %cst_20 = arith.constant 1.000000e+00 : f32
    %37 = vector.broadcast %cst_20 : f32 to vector<16x64xf32>
    %38 = arith.addf %37, %36 : vector<16x64xf32>
    %39 = arith.divf %37, %38 : vector<16x64xf32>
    %40 = arith.mulf %29, %39 : vector<16x64xf32>
    %c0_21 = arith.constant 0 : index
    %c0_22 = arith.constant 0 : index
    %41 = vector.load %arg8[%c0_21, %c0_22] : memref<16x64xf32, #tpu.memory_space<vmem>>, vector<16x64xf32>
    tpu.vector_store %arg8[%c0_21, %c0_22], %40 {strides = array<i32>} : memref<16x64xf32, #tpu.memory_space<vmem>>, vector<16x64xf32>,
    return
  }
  func.func @transform_0(%arg0: i32) -> (i32, i32) {
    %c0_i32 = arith.constant 0 : i32
    %c0_i32_0 = arith.constant 0 : i32
    return %arg0, %c0_i32 : i32, i32
  }
  func.func @transform_1(%arg0: i32) -> (i32, i32) {
    %c0_i32 = arith.constant 0 : i32
    %c0_i32_0 = arith.constant 0 : i32
    %c0_i32_1 = arith.constant 0 : i32
    return %c0_i32, %c0_i32_0 : i32, i32
  }
  func.func @transform_2(%arg0: i32) -> (i32, i32) {
    %c0_i32 = arith.constant 0 : i32
    %c0_i32_0 = arith.constant 0 : i32
    %c0_i32_1 = arith.constant 0 : i32
    return %c0_i32, %c0_i32_0 : i32, i32
  }
  func.func @transform_3(%arg0: i32) -> (i32, i32) {
    %c0_i32 = arith.constant 0 : i32
    %c0_i32_0 = arith.constant 0 : i32
    %c0_i32_1 = arith.constant 0 : i32
    return %c0_i32, %c0_i32_0 : i32, i32
  }
  func.func @transform_4(%arg0: i32) -> (i32, i32) {
    %c0_i32 = arith.constant 0 : i32
    %c0_i32_0 = arith.constant 0 : i32
    %c0_i32_1 = arith.constant 0 : i32
    return %c0_i32, %c0_i32_0 : i32, i32
  }
  func.func @transform_5(%arg0: i32) -> (i32, i32) {
    %c0_i32 = arith.constant 0 : i32
    %c0_i32_0 = arith.constant 0 : i32
    %c0_i32_1 = arith.constant 0 : i32
    return %c0_i32, %c0_i32_0 : i32, i32
  }
  func.func @transform_6(%arg0: i32) -> (i32, i32) {
    %c0_i32 = arith.constant 0 : i32
    %c0_i32_0 = arith.constant 0 : i32
    %c0_i32_1 = arith.constant 0 : i32
    return %c0_i32, %c0_i32_0 : i32, i32
  }
  func.func @transform_7(%arg0: i32) -> (i32, i32) {
    %c0_i32 = arith.constant 0 : i32
    %c0_i32_0 = arith.constant 0 : i32
    return %arg0, %c0_i32 : i32, i32
  }
}

</mosaic_0001>

<bundles_post_ra>
// kernel: tpu_custom_call.1
= control target key start
LH: loop header
LB: loop body
LE: loop exit
PB: predicated region body
PF: predicated region fallthrough
CT: control target
= control target key end

     0   :  { %12 = vsyncpa [#allocation3], 0  ;;  %s701_s0 = inlined_call_operand.hbm [shape: f32[16,32], index: 0, kind: input, shape index: {}]   ;;  %s702_s1 = inlined_call_operand.hbm [shape: bf16[32,32], index: 1, kind: input, shape index: {}]   ;;  %s703_s2 = inlined_call_operand.vmem [shape: f32[1,32], index: 2, kind: input, shape index: {}]   ;;  %s704_s3 = inlined_call_operand.hbm [shape: bf16[32,64], index: 3, kind: input, shape index: {}]   ;;  %s705_s4 = inlined_call_operand.hbm [shape: bf16[32,64], index: 4, kind: input, shape index: {}]   ;;  %s706_s5 = inlined_call_operand.vmem [shape: f32[1,64], index: 5, kind: input, shape index: {}]   ;;  %s707_s6 = inlined_call_operand.vmem [shape: f32[1,64], index: 6, kind: input, shape index: {}]   ;;  %s708_s7 = inlined_call_operand.hbm [shape: f32[16,64], index: 7, kind: output, shape index: {}]  }
   0x1   :  { %13 = vsyncpa [#allocation6], 0 }
   0x2   :  { %14 = vsyncpa [#allocation9], 0 }
   0x3   :  { %15 = vsyncpa [#allocation4], 0  ;;  %s549_s24 = smov [#allocation5]   ;;  %s431_s28 = scalar_lea.hbm %s702_s1, 256 }
   0x4   :  { %s33_s25 = sshll.u32 %s549_s24, 4  ;;  %p432_p0 = scmp.ne.s32.totalorder %s702_s1, %s431_s28  ;;  %s34_s25 = int_to_ptr.vmem [resolvable:$true] %s33_s25 }
   0x5   :  { %p435_p1 = scmp.lt.u32.totalorder %s431_s28, %s702_s1 }
   0x7   :  { %p437_p2 = pnand %p435_p1, %p432_p0 }
   0x9   :  { %440 = shalt.err (!%p437_p2)
}
   0xa   :  { %s441_s10 = scalar_lea.vmem %s34_s25, 256  ;;  %p446_p4 = scmp.lt.s32.totalorder %s34_s25, %s34_s25 }
   0xb   :  { %p442_p3 = scmp.ne.s32.totalorder %s34_s25, %s441_s10  ;;  %p447_p5 = scmp.lt.s32.totalorder %s441_s10, %s441_s10 }
   0xd   :  { %p448_p6 = por %p447_p5, %p446_p4 }
   0xf   :  { %p449_p7 = pnand %p448_p6, %p442_p3 }
  0x11   :  { %452 = shalt.err (!%p449_p7)
}
  0x12   :  { %s550_s11 = smov 64   ;;  %s551_s12 = smov 4  }
  0x13   :  { %39 = dma.hbm_to_vmem [thread:$0]  %s702_s1, 256, %s34_s25, [#allocation6], %s550_s11, %s550_s11, %s551_s12  }
  0x14   :  { %s552_s15 = smov [#allocation2]   ;;  %s453_s19 = scalar_lea.hbm %s701_s0, 256 }
  0x15   :  { %s21_s16 = sshll.u32 %s552_s15, 4  ;;  %p454_p8 = scmp.ne.s32.totalorder %s701_s0, %s453_s19  ;;  %s22_s16 = int_to_ptr.vmem [resolvable:$true] %s21_s16 }
  0x16   :  { %p457_p9 = scmp.lt.u32.totalorder %s453_s19, %s701_s0 }
  0x18   :  { %p459_p10 = pnand %p457_p9, %p454_p8 }
  0x1a   :  { %462 = shalt.err (!%p459_p10)
}
  0x1b   :  { %s463_s24 = scalar_lea.vmem %s22_s16, 256  ;;  %p468_p12 = scmp.lt.s32.totalorder %s22_s16, %s22_s16 }
  0x1c   :  { %p464_p11 = scmp.ne.s32.totalorder %s22_s16, %s463_s24  ;;  %p469_p13 = scmp.lt.s32.totalorder %s463_s24, %s463_s24 }
  0x1e   :  { %p470_p0 = por %p469_p13, %p468_p12 }
  0x20   :  { %p471_p1 = pnand %p470_p0, %p464_p11 }
  0x22   :  { %474 = shalt.err (!%p471_p1)
}
  0x23   :  { %s553_s1 = smov 128   ;;  %s554_s25 = smov 8  }
  0x24   :  { %27 = dma.hbm_to_vmem [thread:$0]  %s701_s0, 256, %s22_s16, [#allocation3], %s553_s1, %s553_s1, %s554_s25  }
  0x25   :  { %s555_s28 = smov [#allocation7]   ;;  %s556_s30 = smov [#allocation8]  }
  0x26   :  { %s47_s29 = sshll.u32 %s555_s28, 4  ;;  %s59_s8 = sshll.u32 %s556_s30, 4  ;;  %s48_s29 = int_to_ptr.vmem [resolvable:$true] %s47_s29  ;;  %s630_s8 = int_to_ptr.vmem [resolvable:$true] %s59_s8 }
  0x27   :  { %s475_s13 = scalar_lea.hbm %s704_s3, 256 }
  0x28   :  { %p476_p2 = scmp.ne.s32.totalorder %s704_s3, %s475_s13  ;;  %p479_p3 = scmp.lt.u32.totalorder %s475_s13, %s704_s3 }
  0x2a   :  { %p481_p4 = pnand %p479_p3, %p476_p2 }
  0x2c   :  { %484 = shalt.err (!%p481_p4)
}
  0x2d   :  { %s485_s0 = scalar_lea.vmem %s48_s29, 256  ;;  %p490_p6 = scmp.lt.s32.totalorder %s48_s29, %s48_s29 }
  0x2e   :  { %p486_p5 = scmp.ne.s32.totalorder %s48_s29, %s485_s0  ;;  %p491_p7 = scmp.lt.s32.totalorder %s485_s0, %s485_s0 }
  0x30   :  { %p492_p8 = por %p491_p7, %p490_p6 }
  0x32   :  { %p493_p9 = pnand %p492_p8, %p486_p5 }
  0x34   :  { %496 = shalt.err (!%p493_p9)
}
  0x35   :  { %53 = dma.hbm_to_vmem [thread:$0]  %s704_s3, 256, %s48_s29, [#allocation6], %s550_s11, %s550_s11, %s551_s12  }
  0x36   :  { %s497_s22 = scalar_lea.hbm %s705_s4, 256 }
  0x37   :  { %p498_p10 = scmp.ne.s32.totalorder %s705_s4, %s497_s22  ;;  %p501_p11 = scmp.lt.u32.totalorder %s497_s22, %s705_s4 }
  0x39   :  { %p503_p12 = pnand %p501_p11, %p498_p10 }
  0x3b   :  { %506 = shalt.err (!%p503_p12)
}
  0x3c   :  { %s507_s28 = scalar_lea.vmem %s630_s8, 256  ;;  %p512_p0 = scmp.lt.s32.totalorder %s630_s8, %s630_s8 }
  0x3d   :  { %p508_p13 = scmp.ne.s32.totalorder %s630_s8, %s507_s28  ;;  %p513_p1 = scmp.lt.s32.totalorder %s507_s28, %s507_s28 }
  0x3f   :  { %p514_p2 = por %p513_p1, %p512_p0 }
  0x41   :  { %p515_p3 = pnand %p514_p2, %p508_p13 }
  0x43   :  { %518 = shalt.err (!%p515_p3)
}
  0x44   :  { %65 = dma.hbm_to_vmem [thread:$0]  %s705_s4, 256, %s630_s8, [#allocation9], %s550_s11, %s550_s11, %s551_s12  }
  0x45   :  { %541 = dma.done.wait [#allocation3], 256  }
  0x46   :  { %542 = vsyncadd [#allocation3], 4294967040 }
  0x47   :  { %543 = dma.done.wait [#allocation6], 512  }
  0x48   :  { %544 = vsyncadd [#allocation6], 4294966784 }
  0x49   :  { %545 = dma.done.wait [#allocation9], 256  }
  0x4a   :  { %546 = vsyncadd [#allocation9], 4294967040  ;;  %vm85_vm0 = vcmask 261120   ;;  %v83_v0 = vld [vmem:[#allocation2] sm:$0xff]  ;;  %v84_v1 = vld [vmem:[#allocation2 + $0x8] sm:$0xff]  ;;  %v557_v15 = vmov 0.0  }
  0x4b   :  { %v86_v2 = vsel %vm85_vm0, %v83_v0, 0.0  ;;  %v89_v3 = vsel %vm85_vm0, %v84_v1, 0.0  ;;  %v409_v14 = vld [vmem:[#allocation5] sm:$0xff]   ;;  %374 = vmatprep.subr.bf16.mxu0 %v557_v15  ;;  %vm558_vm1 = vmmov 0   ;;  %v410_v16 = vld [vmem:[#allocation5 + $0x8] sm:$0xff]   ;;  %382 = vmatprep.subr.bf16.mxu1 %v557_v15  ;;  %v412_v29 = vld [vmem:[#allocation7] sm:$0xff]  }
  0x4c   :  { %87 = vadd.xlane.f32.xlu0 %v86_v2  ;;  %378 = vmatprep.mubr.msk.bf16.mxu0 %vm558_vm1, %v557_v15  ;;  %v411_v28 = vld [vmem:[#allocation8] sm:$0xff]   ;;  %v413_v30 = vld [vmem:[#allocation8 + $0x8] sm:$0xff]   ;;  %v414_v31 = vld [vmem:[#allocation7 + $0x8] sm:$0xff]   ;;  %vm329_vm2 = vcmask 523264   ;;  %s559_s8 = smov [#allocation10]  }
  0x4d   :  { %375 = vmatpush3.bf16.msra.mxu0 %v409_v14  ;;  %386 = vmatprep.mubr.msk.bf16.mxu1 %vm558_vm1, %v557_v15  ;;  %v351_v32 = vld [vmem:[%s703_s2] ss:$0 sm:$0xff]  ;;  %s337_s9 = sshll.u32 %s559_s8, 4  ;;  %s338_s9 = int_to_ptr.vmem [resolvable:$true] %s337_s9 }
  0x4e   :  { %376 = vmatprep.subr.bf16.mxu0 %v557_v15  ;;  %383 = vmatpush3.bf16.msra.mxu1 %v412_v29  ;;  %v359_v42 = vld [vmem:[%s707_s6] ss:$0 sm:$0xff]  ;;  %s519_s10 = scalar_lea.vmem %s338_s9, 256  ;;  %p524_p5 = scmp.lt.s32.totalorder %s338_s9, %s338_s9 }
  0x4f   :  { %384 = vmatprep.subr.bf16.mxu1 %v557_v15  ;;  %v355_v59 = vld [vmem:[%s706_s5] ss:$0 sm:$0xff]  ;;  %p520_p4 = scmp.ne.s32.totalorder %s338_s9, %s519_s10  ;;  %p525_p6 = scmp.lt.s32.totalorder %s519_s10, %s519_s10 }
  0x50   :  { %90 = vadd.xlane.f32.xlu0 %v89_v3 }
  0x51   :  { %377 = vmatpush3.bf16.msra.mxu0 %v410_v16  ;;  %p526_p7 = por %p525_p6, %p524_p5 }
  0x52   :  { %390 = vmatprep.subr.bf16.mxu0 %v557_v15  ;;  %385 = vmatpush3.bf16.msra.mxu1 %v414_v31 }
  0x53   :  { %p527_p8 = pnand %p526_p7, %p520_p4 }
  0xd9   :  { %v88_v4 = vpop.xlane.xlu0 %87 }
  0xda   :  { %v93_v5 = vmul.f32 0.03125, %v88_v4 }
  0xdc   :  { %v95_v6 = vsub.f32 %v83_v0, %v93_v5 }
  0xdd   :  { %v91_v7 = vpop.xlane.xlu0 %90 }
  0xde   :  { %v94_v8 = vmul.f32 0.03125, %v91_v7  ;;  %v97_v9 = vmul.f32 %v95_v6, %v95_v6 }
  0xe0   :  { %v96_v10 = vsub.f32 %v84_v1, %v94_v8  ;;  %v99_v11 = vsel %vm85_vm0, %v97_v9, 0.0 }
  0xe1   :  { %100 = vadd.xlane.f32.xlu1 %v99_v11 }
  0xe2   :  { %v98_v12 = vmul.f32 %v96_v10, %v96_v10 }
  0xe4   :  { %v102_v13 = vsel %vm85_vm0, %v98_v12, 0.0 }
  0xe5   :  { %103 = vadd.xlane.f32.xlu1 %v102_v13 }
 0x16e   :  { %v101_v17 = vpop.xlane.xlu1 %100 }
 0x16f   :  { %v105_v18 = vmul.f32 0.03125, %v101_v17 }
 0x171   :  { %v107_v19 = vadd.f32 1e-05, %v105_v18 }
 0x172   :  { %v104_v20 = vpop.xlane.xlu1 %103 }
 0x173   :  { %v106_v21 = vmul.f32 0.03125, %v104_v20  ;;  %415 = vrsqrt.f32 %v107_v19 }
 0x175   :  { %v108_v22 = vadd.f32 1e-05, %v106_v21 }
 0x177   :  { %417 = vrsqrt.f32 %v108_v22 }
 0x17d   :  { %v416_v23 = vpop.eup %415 }
 0x17e   :  { %v111_v25 = vmul.f32 %v416_v23, %v95_v6 }
 0x181   :  { %v418_v24 = vpop.eup %417 }
 0x182   :  { %v112_v26 = vmul.f32 %v418_v24, %v96_v10 }
 0x184   :  { %v113_v27 = vpack.c.bf16 %v112_v26, %v111_v25 }
 0x186   :  { %379 = vmatmul.mubr.msk.bf16.vlgmr.msra.gmra.mrb[0].mxu0 %vm85_vm0, %v113_v27 }
 0x187   :  { %394 = vmatprep.mubr.msk.bf16.mxu0 %vm558_vm1, %v557_v15  ;;  %391 = vmatpush3.bf16.msra.mxu0 %v411_v28 }
 0x188   :  { %392 = vmatprep.subr.bf16.mxu0 %v557_v15 }
 0x18b   :  { %393 = vmatpush3.bf16.msra.mxu0 %v413_v30 }
 0x259   :  { %v174_v33 = vpop.f32.mrb[0].mxu0 }
 0x25a   :  { %v175_v34 = vadd.f32 %v351_v32, %v174_v33  ;;  %v380_v35 = vpop.f32.mrb[1].mxu0 }
 0x25b   :  { %v177_v36 = vpop.f32.mrb[2].mxu0 }
 0x25c   :  { %v178_v37 = vadd.f32 %v351_v32, %v177_v36  ;;  %v381_v38 = vpop.f32.mrb[3].mxu0  ;;  %419 = vtanh.f32 %v175_v34 }
 0x25e   :  { %421 = vtanh.f32 %v178_v37 }
 0x266   :  { %v420_v39 = vpop.eup %419 }
 0x268   :  { %v422_v40 = vpop.eup %421 }
 0x269   :  { %v183_v41 = vpack.c.bf16 %v422_v40, %v420_v39 }
 0x26b   :  { %387 = vmatmul.mubr.msk.bf16.vlgmr.msra.gmra.mrb[0].mxu1 %vm85_vm0, %v183_v41  ;;  %395 = vmatmul.mubr.msk.bf16.vlgmr.msra.gmra.mrb[4].mxu0 %vm85_vm0, %v183_v41 }
 0x33e   :  { %v244_v43 = vpop.f32.mrb[0].mxu1  ;;  %v308_v44 = vpop.f32.mrb[4].mxu0 }
 0x33f   :  { %v309_v45 = vadd.f32 %v359_v42, %v308_v44  ;;  %v388_v46 = vpop.f32.mrb[1].mxu1  ;;  %v396_v47 = vpop.f32.mrb[5].mxu0  ;;  %v245_v60 = vadd.f32 %v355_v59, %v244_v43 }
 0x340   :  { %v247_v48 = vpop.f32.mrb[2].mxu1  ;;  %v311_v49 = vpop.f32.mrb[6].mxu0 }
 0x341   :  { %v363_v50 = vmul.f32 -1.442695, %v309_v45  ;;  %v312_v51 = vadd.f32 %v359_v42, %v311_v49  ;;  %v389_v52 = vpop.f32.mrb[3].mxu1  ;;  %v397_v53 = vpop.f32.mrb[7].mxu0  ;;  %v248_v62 = vadd.f32 %v355_v59, %v247_v48 }
 0x343   :  { %423 = vpow2.f32 %v363_v50  ;;  %v364_v54 = vmul.f32 -1.442695, %v312_v51 }
 0x345   :  { %425 = vpow2.f32 %v364_v54 }
 0x34d   :  { %v424_v55 = vpop.eup %423 }
 0x34e   :  { %v321_v56 = vadd.f32 1.0, %v424_v55 }
 0x34f   :  { %v426_v57 = vpop.eup %425 }
 0x350   :  { %427 = vrcp.f32 %v321_v56  ;;  %v322_v58 = vadd.f32 1.0, %v426_v57 }
 0x352   :  { %429 = vrcp.f32 %v322_v58 }
 0x35a   :  { %v428_v61 = vpop.eup %427 }
 0x35b   :  { %v327_v63 = vmul.f32 %v428_v61, %v245_v60 }
 0x35c   :  { %v430_v0 = vpop.eup %429 }
 0x35d   :  { %v328_v1 = vmul.f32 %v430_v0, %v248_v62  ;;  %330 = vst.msk [vmem:[#allocation10] sm:$0xff] %vm329_vm2, %v327_v63 }
 0x35f   :  { %331 = vst.msk [vmem:[#allocation10 + $0x8] sm:$0xff] %vm329_vm2, %v328_v1 }
 0x360   :  { %530 = shalt.err (!%p527_p8)
}
 0x361   :  { %s531_s14 = scalar_lea.hbm %s708_s7, 256 }
 0x362   :  { %p532_p9 = scmp.ne.s32.totalorder %s708_s7, %s531_s14  ;;  %p535_p10 = scmp.lt.u32.totalorder %s531_s14, %s708_s7 }
 0x364   :  { %p537_p11 = pnand %p535_p10, %p532_p9 }
 0x366   :  { %540 = shalt.err (!%p537_p11)
}
 0x367   :  { %343 = dma.vmem_to_hbm [thread:$0]  %s338_s9, 256, %s708_s7, [#allocation4], %s553_s1, %s553_s1, %s554_s25  }
 0x368   :  { %547 = dma.done.wait [#allocation4], 256  }
 0x369   :  { %548 = vsyncadd [#allocation4], 4294967040 }
 0x36a   :  { %347 = vsyncpa [#allocation3], 1 }
 0x36b   :  { %348 = vsyncpa [#allocation6], 1 }
 0x36c   :  { %349 = vsyncpa [#allocation9], 1 }
 0x36d   :  { %350 = vsyncpa [#allocation4], 1 }

</bundles_post_ra>
